<compile_context>
chip_gen: v7x
topology: tpu7x:2x2x1
jax: 0.10.0
libtpu: 0.0.40
codegen_flags: <defaults>
</compile_context>

<pallas_src>
import jax
import jax.numpy as jnp
from jax.experimental import pallas as pl
from jax.experimental.pallas import tpu as pltpu

# ---------------- small config (consistent with the module) ----------------
B = 2            # batch size
T = 8            # max sentence length
D = 32           # input_dim (word representation size)
LABEL_SIZE = 8   # label_size
LANE = 128       # TPU lane width; output lanes padded to this
TILE_M = 512     # row-tile size for the 1-D grid (used when B*T > TILE_M)


# =====================================================================
# Kernel: fused hidden2tag linear projection on one row tile
#   out[m, :] = x[m, :] @ W_padded + b_padded       (single MXU matmul)
# =====================================================================
def linear_encoder_kernel(x_ref, w_ref, b_ref, out_ref):
    # x_ref  : (tile_m, D)   flattened word representations
    # w_ref  : (D, Lp)       pre-transposed weight, zero-padded to Lp = 128 lanes
    # b_ref  : (1, Lp)       bias, zero-padded
    # out_ref: (tile_m, Lp)  lane-dense emission scores (valid cols = label_size)
    out_ref[...] = (
        jnp.dot(x_ref[...], w_ref[...], preferred_element_type=jnp.float32)
        + b_ref[...]
    )


# =====================================================================
# Wrapper (glue): flatten, tiled pallas_call, optional un-pad
# =====================================================================
def linear_encoder(word_rep, word_seq_lens, params, unpad=True):
    """word_rep: (B, T, D) batch-first.
    Returns emissions (B, T, label_size) if unpad, else the lane-dense
    (B*T, 128) padded emissions (padded label columns are 0, not -inf).

    word_seq_lens is accepted to match the PyTorch forward signature but is
    unused there (the Linear layer is applied to every position)."""
    del word_seq_lens  # unused by LinearEncoder.forward
    Bb, Tt, Dd = word_rep.shape
    label_size = int(params['label_size'])
    w_t = params['w_t_padded']          # (D, Lp), prepped once at init
    b_p = params['b_padded']            # (1, Lp)
    Lp = w_t.shape[1]

    # Flatten to (M, D) in XLA (outside the kernel).  No explicit padding:
    # the whole-array block (small M) is exempt from the (8,128) rule, and the
    # gridded path lets Pallas handle the ragged last tile.
    M = Bb * Tt
    x2d = word_rep.reshape(M, Dd).astype(jnp.float32)

    # Row-tile size: whole array when small (block == full dim is exempt),
    # TILE_M (multiple of 8) otherwise.
    tile_m = M if M <= TILE_M else TILE_M
    grid_m = pl.cdiv(M, tile_m)

    out2d = pl.pallas_call(
        linear_encoder_kernel,
        out_shape=jax.ShapeDtypeStruct((M, Lp), jnp.float32),
        grid=(grid_m,),
        in_specs=[
            pl.BlockSpec((tile_m, Dd), lambda i: (i, 0)),   # x: marches over rows
            pl.BlockSpec((Dd, Lp), lambda i: (0, 0)),       # W: VMEM-resident
            pl.BlockSpec((1, Lp), lambda i: (0, 0)),        # b: VMEM-resident
        ],
        out_specs=pl.BlockSpec((tile_m, Lp), lambda i: (i, 0)),
        compiler_params=pltpu.CompilerParams(
            dimension_semantics=("parallel",),              # megacore on v7x
        ),
        cost_estimate=pl.CostEstimate(
            flops=2 * M * Dd * Lp,
            transcendentals=0,
            bytes_accessed=4 * (M * Dd + Dd * Lp + Lp + M * Lp),
        ),
    )(x2d, w_t, b_p)

    if not unpad:
        # Downstream consumer reads the lane-dense layout directly; it must
        # mask columns >= label_size before any logsumexp/argmax over labels.
        return out2d

    # Un-pad (layout plumbing in XLA, not compute).
    return out2d[:, :label_size].reshape(Bb, Tt, label_size)


# =====================================================================
# Deterministic parameter init (shapes from nn.Linear(input_dim, label_size));
# weight is pre-transposed and lane-padded ONCE so the per-call wrapper does
# no parameter reshaping.
# =====================================================================
def init_params(key, input_dim=D, label_size=LABEL_SIZE):
    k1, k2 = jax.random.split(key)
    s = 0.1
    # nn.Linear stores weight as (out_features, in_features)
    w = jax.random.normal(k1, (label_size, input_dim), jnp.float32) * s
    b = jax.random.normal(k2, (label_size,), jnp.float32) * s

    lp = max(LANE, ((label_size + LANE - 1) // LANE) * LANE)
    w_t_padded = jnp.zeros((input_dim, lp), jnp.float32).at[:, :label_size].set(w.T)
    b_padded = jnp.zeros((1, lp), jnp.float32).at[0, :label_size].set(b)

    return {
        'w': w, 'b': b,                 # reference copies (PyTorch layout)
        'w_t_padded': w_t_padded,       # (D, 128) kernel layout
        'b_padded': b_padded,           # (1, 128)
        'label_size': label_size,
    }


if __name__ == "__main__":
    key = jax.random.PRNGKey(0)
    pkey, xkey, xkey2 = jax.random.split(key, 3)
    params = init_params(pkey)

    # --- small config matching the module (single-tile path) ---
    word_rep = jax.random.normal(xkey, (B, T, D), jnp.float32)
    word_seq_lens = jnp.array([T, 5], dtype=jnp.int32)   # unused by the forward

    fwd = jax.jit(lambda x, l: linear_encoder(x, l, params))
    out = jax.block_until_ready(fwd(word_rep, word_seq_lens))

    # Pure-JAX reference: word_rep @ W.T + b (the nn.Linear forward).
    ref = jnp.einsum('btd,ld->btl', word_rep, params['w']) + params['b']
    assert out.shape == (B, T, LABEL_SIZE), out.shape
    assert bool(jnp.isfinite(out).all()), "output is not finite"
    assert bool(jnp.allclose(out, ref, atol=1e-5, rtol=1e-5)), "mismatch vs reference"

    # --- secondary check: exercise the multi-tile grid + ragged last tile ---
    B2, T2 = 4, 300                      # M = 1200 -> 3 row tiles of 512
    word_rep2 = jax.random.normal(xkey2, (B2, T2, D), jnp.float32)
    lens2 = jnp.full((B2,), T2, dtype=jnp.int32)
    out2 = jax.block_until_ready(jax.jit(
        lambda x, l: linear_encoder(x, l, params))(word_rep2, lens2))
    ref2 = jnp.einsum('btd,ld->btl', word_rep2, params['w']) + params['b']
    assert out2.shape == (B2, T2, LABEL_SIZE), out2.shape
    assert bool(jnp.allclose(out2, ref2, atol=1e-5, rtol=1e-5)), "tiled mismatch"

    print("KERNEL_OK")
</pallas_src>

<mosaic_0001>
module attributes {stable_mosaic.version = 11 : i64} {
  func.func @linear_encoder_kernel(%arg0: i32, %arg1: memref<16x32xf32, #tpu.memory_space<vmem>>, %arg2: memref<32x128xf32, #tpu.memory_space<vmem>>, %arg3: memref<1x128xf32, #tpu.memory_space<vmem>>, %arg4: memref<16x128xf32, #tpu.memory_space<vmem>>) attributes {dimension_semantics = [#tpu.dimension_semantics<parallel>], iteration_bounds = array<i64: 1>, scalar_prefetch = 0 : i64, scratch_operands = 0 : i64, tpu.core_type = #tpu.core_type<tc>, window_params = [{transform_indices = @transform_0, window_bounds = array<i64: 16, 32>}, {pipeline_mode = #tpu.pipeline_mode<synchronous>, transform_indices = @transform_1, window_bounds = array<i64: 32, 128>}, {pipeline_mode = #tpu.pipeline_mode<synchronous>, transform_indices = @transform_2, window_bounds = array<i64: 1, 128>}, {transform_indices = @transform_3, window_bounds = array<i64: 16, 128>}]} {
    %c0 = arith.constant 0 : index
    %c0_0 = arith.constant 0 : index
    %0 = vector.load %arg1[%c0, %c0_0] : memref<16x32xf32, #tpu.memory_space<vmem>>, vector<16x32xf32>
    %c0_1 = arith.constant 0 : index
    %c0_2 = arith.constant 0 : index
    %1 = vector.load %arg2[%c0_1, %c0_2] : memref<32x128xf32, #tpu.memory_space<vmem>>, vector<32x128xf32>
    %cst = arith.constant dense<0.000000e+00> : vector<16x128xf32>
    %2 = tpu.matmul %0, %1, %cst {dimension_numbers = #tpu.dot_dimension_numbers<[1], [0], [0], [1], [0, 0, 1, 1], [], []>} : vector<16x32xf32>, vector<32x128xf32>, vector<16x128xf32> -> vector<16x128xf32>
    %c0_3 = arith.constant 0 : index
    %c0_4 = arith.constant 0 : index
    %3 = vector.load %arg3[%c0_3, %c0_4] : memref<1x128xf32, #tpu.memory_space<vmem>>, vector<1x128xf32>
    %4 = vector.broadcast %3 : vector<1x128xf32> to vector<16x128xf32>
    %5 = arith.addf %2, %4 : vector<16x128xf32>
    %c0_5 = arith.constant 0 : index
    %c0_6 = arith.constant 0 : index
    %6 = vector.load %arg4[%c0_5, %c0_6] : memref<16x128xf32, #tpu.memory_space<vmem>>, vector<16x128xf32>
    tpu.vector_store %arg4[%c0_5, %c0_6], %5 {strides = array<i32>} : memref<16x128xf32, #tpu.memory_space<vmem>>, vector<16x128xf32>,
    return
  }
  func.func @transform_0(%arg0: i32) -> (i32, i32) {
    %c0_i32 = arith.constant 0 : i32
    %c0_i32_0 = arith.constant 0 : i32
    return %arg0, %c0_i32 : i32, i32
  }
  func.func @transform_1(%arg0: i32) -> (i32, i32) {
    %c0_i32 = arith.constant 0 : i32
    %c0_i32_0 = arith.constant 0 : i32
    %c0_i32_1 = arith.constant 0 : i32
    return %c0_i32, %c0_i32_0 : i32, i32
  }
  func.func @transform_2(%arg0: i32) -> (i32, i32) {
    %c0_i32 = arith.constant 0 : i32
    %c0_i32_0 = arith.constant 0 : i32
    %c0_i32_1 = arith.constant 0 : i32
    return %c0_i32, %c0_i32_0 : i32, i32
  }
  func.func @transform_3(%arg0: i32) -> (i32, i32) {
    %c0_i32 = arith.constant 0 : i32
    %c0_i32_0 = arith.constant 0 : i32
    return %arg0, %c0_i32 : i32, i32
  }
}

</mosaic_0001>

<bundles_post_ra>
// kernel: _lambda_.1
= control target key start
LH: loop header
LB: loop body
LE: loop exit
PB: predicated region body
PF: predicated region fallthrough
CT: control target
= control target key end

     0   :  { %8 = vsyncpa [#allocation3], 0  ;;  %s282_s0 = inlined_call_operand.hbm [shape: f32[16,32], index: 0, kind: input, shape index: {}]   ;;  %s283_s1 = inlined_call_operand.hbm [shape: f32[32,128], index: 1, kind: input, shape index: {}]   ;;  %s284_s2 = inlined_call_operand.vmem [shape: f32[1,128], index: 2, kind: input, shape index: {}]   ;;  %s285_s3 = inlined_call_operand.vmem [shape: f32[16,128], index: 3, kind: output, shape index: {}]  }
   0x1   :  { %9 = vsyncpa [#allocation5], 0  ;;  %s225_s12 = smov [#allocation2]   ;;  %s177_s16 = scalar_lea.hbm %s282_s0, 256 }
   0x2   :  { %s15_s13 = sshll.u32 %s225_s12, 4  ;;  %p178_p0 = scmp.ne.s32.totalorder %s282_s0, %s177_s16  ;;  %s16_s13 = int_to_ptr.vmem [resolvable:$true] %s15_s13 }
   0x3   :  { %p181_p1 = scmp.lt.u32.totalorder %s177_s16, %s282_s0 }
   0x5   :  { %p183_p2 = pnand %p181_p1, %p178_p0 }
   0x7   :  { %186 = shalt.err (!%p183_p2)
}
   0x8   :  { %s187_s21 = scalar_lea.vmem %s16_s13, 256  ;;  %p192_p4 = scmp.lt.s32.totalorder %s16_s13, %s16_s13 }
   0x9   :  { %p188_p3 = scmp.ne.s32.totalorder %s16_s13, %s187_s21  ;;  %p193_p5 = scmp.lt.s32.totalorder %s187_s21, %s187_s21 }
   0xb   :  { %p194_p6 = por %p193_p5, %p192_p4 }
   0xd   :  { %p195_p7 = pnand %p194_p6, %p188_p3 }
   0xf   :  { %198 = shalt.err (!%p195_p7)
}
  0x10   :  { %s226_s22 = smov 128   ;;  %s227_s23 = smov 8  }
  0x11   :  { %21 = dma.hbm_to_vmem [thread:$0]  %s282_s0, 256, %s16_s13, [#allocation3], %s226_s22, %s226_s22, %s227_s23  }
  0x12   :  { %s228_s26 = smov [#allocation4]   ;;  %s199_s30 = scalar_lea.hbm %s283_s1, 512 }
  0x13   :  { %s27_s27 = sshll.u32 %s228_s26, 4  ;;  %p200_p8 = scmp.ne.s32.totalorder %s283_s1, %s199_s30  ;;  %s28_s27 = int_to_ptr.vmem [resolvable:$true] %s27_s27 }
  0x14   :  { %p203_p9 = scmp.lt.u32.totalorder %s199_s30, %s283_s1 }
  0x16   :  { %p205_p10 = pnand %p203_p9, %p200_p8 }
  0x18   :  { %208 = shalt.err (!%p205_p10)
}
  0x19   :  { %s209_s8 = scalar_lea.vmem %s28_s27, 512  ;;  %p214_p12 = scmp.lt.s32.totalorder %s28_s27, %s28_s27 }
  0x1a   :  { %p210_p11 = scmp.ne.s32.totalorder %s28_s27, %s209_s8  ;;  %p215_p13 = scmp.lt.s32.totalorder %s209_s8, %s209_s8 }
  0x1c   :  { %p216_p0 = por %p215_p13, %p214_p12 }
  0x1e   :  { %p217_p1 = pnand %p216_p0, %p210_p11 }
  0x20   :  { %220 = shalt.err (!%p217_p1)
}
  0x21   :  { %33 = dma.hbm_to_vmem [thread:$0]  %s283_s1, 512, %s28_s27, [#allocation5], %s226_s22, %s226_s22, %s227_s23  }
  0x22   :  { %221 = dma.done.wait [#allocation3], 256  }
  0x23   :  { %222 = vsyncadd [#allocation3], 4294967040 }
  0x24   :  { %223 = dma.done.wait [#allocation5], 512  }
  0x25   :  { %224 = vsyncadd [#allocation5], 4294966784  ;;  %vm55_vm0 = vcmask 261120   ;;  %v44_v0 = vld [vmem:[#allocation4] sm:$0xff]  ;;  %v45_v1 = vld [vmem:[#allocation4 + $0x8] sm:$0xff] }
  0x26   :  { %v46_v2 = vld [vmem:[#allocation4 + $0x10] sm:$0xff]  ;;  %v165_v3 = vpack.c.bf16 %v45_v1, %v44_v0  ;;  %v47_v4 = vld [vmem:[#allocation4 + $0x18] sm:$0xff] }
  0x27   :  { %v42_v5 = vld [vmem:[#allocation2] sm:$0xff]  ;;  %v169_v6 = vpack.c.bf16 %v47_v4, %v46_v2  ;;  %v43_v7 = vld [vmem:[#allocation2 + $0x8] sm:$0xff] }
  0x28   :  { %162 = vmatprep.mubr.msk.f32.mxu0 %vm55_vm0, %v42_v5  ;;  %166 = vmatprep.subr.bf16.mxu0 %v165_v3  ;;  %v145_v8 = vld [vmem:[%s284_s2] ss:$0 sm:$0xff] }
  0x29   :  { %168 = vmatpush3.bf16.msra.mxu0 %v165_v3 }
  0x2a   :  { %170 = vmatprep.subr.bf16.mxu0 %v169_v6 }
  0x2d   :  { %172 = vmatpush3.bf16.msra.mxu0 %v169_v6 }
  0x30   :  { %163 = vmatmul.mubr.msk.f32.vlgmr.msra.gmra.mrb[0].mxu0 %vm55_vm0, %v43_v7 }
 0x103   :  { %v164_v9 = vpop.f32.mrb[0].mxu0 }
 0x104   :  { %v134_v10 = vadd.f32 %v164_v9, %v145_v8  ;;  %v128_v11 = vpop.f32.mrb[1].mxu0 }
 0x105   :  { %v129_v12 = vadd.f32 %v145_v8, %v128_v11 }
 0x106   :  { %138 = vst [vmem:[%s285_s3 + $0x8] sm:$0xff] %v134_v10 }
 0x107   :  { %137 = vst [vmem:[%s285_s3] sm:$0xff] %v129_v12 }
 0x108   :  { %143 = vsyncpa [#allocation3], 1 }
 0x109   :  { %144 = vsyncpa [#allocation5], 1 }

</bundles_post_ra>
